<compile_context>
chip_gen: v5e
topology: v5e:2x2
jax: 0.10.0
libtpu: 0.0.40
codegen_flags: <defaults>
</compile_context>

<pallas_src>
import functools

import jax
import jax.numpy as jnp
from jax.experimental import pallas as pl
from jax.experimental.pallas import tpu as pltpu

LOG_SIG_MAX = 2.0
LOG_SIG_MIN = -20.0

LANE = 128
SUBLANE = 8


def _round_up(x, m):
    return (x + m - 1) // m * m


# ---------------------------------------------------------------------------
# Kernel
# ---------------------------------------------------------------------------
def gaussian_net_kernel(
    state_ref,                      # [TILE_B, num_inputs]     (bf16)
    w1_ref, b1_ref,                 # [num_inputs, Hp], [1, Hp]
    w2_ref, b2_ref,                 # [Hp, Hp],         [1, Hp]
    wh_ref, bh_ref,                 # [Hp, HEADp],      [1, HEADp]  (fused heads)
    out_ref,                        # [TILE_B, HEADp]  f32 (mean | log_std | pad)
    *, num_outputs,
):
    x = state_ref[...]
    compute_dtype = x.dtype

    # linear1 + ReLU (f32 accumulation, bf16 re-cast for the next MXU push)
    h1 = jnp.dot(x, w1_ref[...], preferred_element_type=jnp.float32) + b1_ref[...]
    h1 = jnp.maximum(h1, 0.0).astype(compute_dtype)

    # linear2 + ReLU
    h2 = jnp.dot(h1, w2_ref[...], preferred_element_type=jnp.float32) + b2_ref[...]
    h2 = jnp.maximum(h2, 0.0).astype(compute_dtype)

    # fused mean / log_std head
    head = jnp.dot(h2, wh_ref[...], preferred_element_type=jnp.float32) + bh_ref[...]

    # clamp only the log_std lanes [num_outputs, 2*num_outputs)
    col = jax.lax.broadcasted_iota(jnp.int32, head.shape, dimension=1)
    is_log_std = (col >= num_outputs) & (col < 2 * num_outputs)
    head = jnp.where(is_log_std, jnp.clip(head, LOG_SIG_MIN, LOG_SIG_MAX), head)

    out_ref[...] = head.astype(out_ref.dtype)


# ---------------------------------------------------------------------------
# Parameter init / packing
# ---------------------------------------------------------------------------
def xavier_uniform(key, fan_in, fan_out, gain=1.0, dtype=jnp.float32):
    # Matches torch.nn.init.xavier_uniform_ for nn.Linear; stored as [in, out].
    limit = gain * jnp.sqrt(6.0 / (fan_in + fan_out))
    return jax.random.uniform(key, (fan_in, fan_out), dtype, -limit, limit)


def init_params(key, num_inputs, num_outputs, hidden_dim=64):
    k1, k2, k3, k4 = jax.random.split(key, 4)
    return {
        "w1": xavier_uniform(k1, num_inputs, hidden_dim),
        "b1": jnp.zeros((1, hidden_dim), jnp.float32),
        "w2": xavier_uniform(k2, hidden_dim, hidden_dim),
        "b2": jnp.zeros((1, hidden_dim), jnp.float32),
        "wm": xavier_uniform(k3, hidden_dim, num_outputs),
        "bm": jnp.zeros((1, num_outputs), jnp.float32),
        "ws": xavier_uniform(k4, hidden_dim, num_outputs),
        "bs": jnp.zeros((1, num_outputs), jnp.float32),
    }


def pack_params(params, compute_dtype=jnp.bfloat16):
    """Pad lane dims to 128, fuse the two heads, and cast weights to bf16."""
    num_inputs, hidden = params["w1"].shape
    num_outputs = params["wm"].shape[1]
    h_p = _round_up(hidden, LANE)
    head_p = _round_up(2 * num_outputs, LANE)

    def pad2(a, rows, cols):
        return jnp.pad(a, ((0, rows - a.shape[0]), (0, cols - a.shape[1])))

    w_head = jnp.concatenate([params["wm"], params["ws"]], axis=1)
    b_head = jnp.concatenate([params["bm"], params["bs"]], axis=1)

    return {
        "w1": pad2(params["w1"], num_inputs, h_p).astype(compute_dtype),
        "b1": pad2(params["b1"], 1, h_p).astype(jnp.float32),
        "w2": pad2(params["w2"], h_p, h_p).astype(compute_dtype),
        "b2": pad2(params["b2"], 1, h_p).astype(jnp.float32),
        "wh": pad2(w_head, h_p, head_p).astype(compute_dtype),
        "bh": pad2(b_head, 1, head_p).astype(jnp.float32),
        "num_outputs": num_outputs,
        "compute_dtype": compute_dtype,
    }


# ---------------------------------------------------------------------------
# Wrapper
# ---------------------------------------------------------------------------
def gaussian_net_forward(state, packed, *, tile_b=256):
    """state: [B, num_inputs] -> (mean [B, A], log_std [B, A]) both f32."""
    B, num_inputs = state.shape
    num_outputs = packed["num_outputs"]
    compute_dtype = packed["compute_dtype"]
    head_p = packed["wh"].shape[1]

    # Batch tile: multiple of 8 sublanes, capped so small batches use one tile.
    # (tile_b=256 keeps VMEM use tiny, well under v7x's 64 MiB even with
    # double-buffering of state + fused output.)
    tile_b = _round_up(min(tile_b, _round_up(B, SUBLANE)), SUBLANE)
    b_pad = _round_up(B, tile_b)

    x = state.astype(compute_dtype)
    if b_pad != B:
        x = jnp.pad(x, ((0, b_pad - B), (0, 0)))

    grid = (b_pad // tile_b,)

    def const_spec(shape):
        # Resident in VMEM across all grid steps (same block every iteration).
        return pl.BlockSpec(shape, lambda i: (0, 0))

    kernel = functools.partial(gaussian_net_kernel, num_outputs=num_outputs)

    fused = pl.pallas_call(
        kernel,
        grid=grid,
        in_specs=[
            pl.BlockSpec((tile_b, num_inputs), lambda i: (i, 0)),   # state tile
            const_spec(packed["w1"].shape),
            const_spec(packed["b1"].shape),
            const_spec(packed["w2"].shape),
            const_spec(packed["b2"].shape),
            const_spec(packed["wh"].shape),
            const_spec(packed["bh"].shape),
        ],
        out_specs=pl.BlockSpec((tile_b, head_p), lambda i: (i, 0)),
        out_shape=jax.ShapeDtypeStruct((b_pad, head_p), jnp.float32),
        compiler_params=pltpu.CompilerParams(
            dimension_semantics=("parallel",),
        ),
    )(x, packed["w1"], packed["b1"], packed["w2"], packed["b2"],
      packed["wh"], packed["bh"])

    mean = fused[:B, :num_outputs]
    log_std = fused[:B, num_outputs:2 * num_outputs]
    return mean, log_std


# ---------------------------------------------------------------------------
# Plain-JAX reference (same bf16 weights / f32 accumulation path)
# ---------------------------------------------------------------------------
def reference_forward(state, params, compute_dtype=jnp.bfloat16):
    x = state.astype(compute_dtype)
    w1 = params["w1"].astype(compute_dtype)
    w2 = params["w2"].astype(compute_dtype)
    wm = params["wm"].astype(compute_dtype)
    ws = params["ws"].astype(compute_dtype)
    h1 = jnp.maximum(
        jnp.dot(x, w1, preferred_element_type=jnp.float32) + params["b1"], 0.0
    ).astype(compute_dtype)
    h2 = jnp.maximum(
        jnp.dot(h1, w2, preferred_element_type=jnp.float32) + params["b2"], 0.0
    ).astype(compute_dtype)
    mean = jnp.dot(h2, wm, preferred_element_type=jnp.float32) + params["bm"]
    log_std = jnp.clip(
        jnp.dot(h2, ws, preferred_element_type=jnp.float32) + params["bs"],
        LOG_SIG_MIN, LOG_SIG_MAX,
    )
    return mean, log_std


if __name__ == "__main__":
    key = jax.random.PRNGKey(0)
    k_state, k_params = jax.random.split(key)

    batch = 8
    num_inputs = 16
    num_outputs = 8
    hidden_dim = 64

    state = jax.random.normal(k_state, (batch, num_inputs), jnp.float32)
    params = init_params(k_params, num_inputs, num_outputs, hidden_dim)
    packed = pack_params(params, compute_dtype=jnp.bfloat16)

    mean, log_std = gaussian_net_forward(state, packed)
    jax.block_until_ready((mean, log_std))

    # Sanity-check against plain JAX reference (same bf16/f32 numerics).
    mean_ref, log_std_ref = reference_forward(state, params)
    assert mean.shape == (batch, num_outputs)
    assert log_std.shape == (batch, num_outputs)
    assert jnp.allclose(mean, mean_ref, atol=1e-2, rtol=1e-2), "mean mismatch"
    assert jnp.allclose(log_std, log_std_ref, atol=1e-2, rtol=1e-2), "log_std mismatch"

    print("KERNEL_OK")
</pallas_src>

<mosaic_0001>
module attributes {stable_mosaic.version = 11 : i64} {
  func.func @gaussian_net_kernel(%arg0: i32, %arg1: memref<8x16xbf16, #tpu.memory_space<vmem>>, %arg2: memref<16x128xbf16, #tpu.memory_space<vmem>>, %arg3: memref<1x128xf32, #tpu.memory_space<vmem>>, %arg4: memref<128x128xbf16, #tpu.memory_space<vmem>>, %arg5: memref<1x128xf32, #tpu.memory_space<vmem>>, %arg6: memref<128x128xbf16, #tpu.memory_space<vmem>>, %arg7: memref<1x128xf32, #tpu.memory_space<vmem>>, %arg8: memref<8x128xf32, #tpu.memory_space<vmem>>) attributes {dimension_semantics = [#tpu.dimension_semantics<parallel>], iteration_bounds = array<i64: 1>, scalar_prefetch = 0 : i64, scratch_operands = 0 : i64, tpu.core_type = #tpu.core_type<tc>, window_params = [{transform_indices = @transform_0, window_bounds = array<i64: 8, 16>}, {pipeline_mode = #tpu.pipeline_mode<synchronous>, transform_indices = @transform_1, window_bounds = array<i64: 16, 128>}, {pipeline_mode = #tpu.pipeline_mode<synchronous>, transform_indices = @transform_2, window_bounds = array<i64: 1, 128>}, {pipeline_mode = #tpu.pipeline_mode<synchronous>, transform_indices = @transform_3, window_bounds = array<i64: 128, 128>}, {pipeline_mode = #tpu.pipeline_mode<synchronous>, transform_indices = @transform_4, window_bounds = array<i64: 1, 128>}, {pipeline_mode = #tpu.pipeline_mode<synchronous>, transform_indices = @transform_5, window_bounds = array<i64: 128, 128>}, {pipeline_mode = #tpu.pipeline_mode<synchronous>, transform_indices = @transform_6, window_bounds = array<i64: 1, 128>}, {transform_indices = @transform_7, window_bounds = array<i64: 8, 128>}]} {
    %c0 = arith.constant 0 : index
    %c0_0 = arith.constant 0 : index
    %0 = vector.load %arg1[%c0, %c0_0] : memref<8x16xbf16, #tpu.memory_space<vmem>>, vector<8x16xbf16>
    %c0_1 = arith.constant 0 : index
    %c0_2 = arith.constant 0 : index
    %1 = vector.load %arg2[%c0_1, %c0_2] : memref<16x128xbf16, #tpu.memory_space<vmem>>, vector<16x128xbf16>
    %cst = arith.constant dense<0.000000e+00> : vector<8x128xf32>
    %2 = tpu.matmul %0, %1, %cst {dimension_numbers = #tpu.dot_dimension_numbers<[1], [0], [0], [1], [0, 0, 1, 1], [], []>} : vector<8x16xbf16>, vector<16x128xbf16>, vector<8x128xf32> -> vector<8x128xf32>
    %c0_3 = arith.constant 0 : index
    %c0_4 = arith.constant 0 : index
    %3 = vector.load %arg3[%c0_3, %c0_4] : memref<1x128xf32, #tpu.memory_space<vmem>>, vector<1x128xf32>
    %4 = vector.broadcast %3 : vector<1x128xf32> to vector<8x128xf32>
    %5 = arith.addf %2, %4 : vector<8x128xf32>
    %cst_5 = arith.constant 0.000000e+00 : f32
    %6 = vector.broadcast %cst_5 : f32 to vector<8x128xf32>
    %7 = arith.maximumf %5, %6 : vector<8x128xf32>
    %8 = arith.truncf %7 : vector<8x128xf32> to vector<8x128xbf16>
    %c0_6 = arith.constant 0 : index
    %c0_7 = arith.constant 0 : index
    %9 = vector.load %arg4[%c0_6, %c0_7] : memref<128x128xbf16, #tpu.memory_space<vmem>>, vector<128x128xbf16>
    %cst_8 = arith.constant dense<0.000000e+00> : vector<8x128xf32>
    %10 = tpu.matmul %8, %9, %cst_8 {dimension_numbers = #tpu.dot_dimension_numbers<[1], [0], [0], [1], [0, 0, 1, 1], [], []>} : vector<8x128xbf16>, vector<128x128xbf16>, vector<8x128xf32> -> vector<8x128xf32>
    %c0_9 = arith.constant 0 : index
    %c0_10 = arith.constant 0 : index
    %11 = vector.load %arg5[%c0_9, %c0_10] : memref<1x128xf32, #tpu.memory_space<vmem>>, vector<1x128xf32>
    %12 = vector.broadcast %11 : vector<1x128xf32> to vector<8x128xf32>
    %13 = arith.addf %10, %12 : vector<8x128xf32>
    %cst_11 = arith.constant 0.000000e+00 : f32
    %14 = vector.broadcast %cst_11 : f32 to vector<8x128xf32>
    %15 = arith.maximumf %13, %14 : vector<8x128xf32>
    %16 = arith.truncf %15 : vector<8x128xf32> to vector<8x128xbf16>
    %c0_12 = arith.constant 0 : index
    %c0_13 = arith.constant 0 : index
    %17 = vector.load %arg6[%c0_12, %c0_13] : memref<128x128xbf16, #tpu.memory_space<vmem>>, vector<128x128xbf16>
    %cst_14 = arith.constant dense<0.000000e+00> : vector<8x128xf32>
    %18 = tpu.matmul %16, %17, %cst_14 {dimension_numbers = #tpu.dot_dimension_numbers<[1], [0], [0], [1], [0, 0, 1, 1], [], []>} : vector<8x128xbf16>, vector<128x128xbf16>, vector<8x128xf32> -> vector<8x128xf32>
    %c0_15 = arith.constant 0 : index
    %c0_16 = arith.constant 0 : index
    %19 = vector.load %arg7[%c0_15, %c0_16] : memref<1x128xf32, #tpu.memory_space<vmem>>, vector<1x128xf32>
    %20 = vector.broadcast %19 : vector<1x128xf32> to vector<8x128xf32>
    %21 = arith.addf %18, %20 : vector<8x128xf32>
    %22 = tpu.iota {dimensions = array<i32: 1>} : vector<8x128xi32>
    %c8_i32 = arith.constant 8 : i32
    %23 = vector.broadcast %c8_i32 : i32 to vector<8x128xi32>
    %24 = arith.cmpi sge, %22, %23 : vector<8x128xi32>
    %c16_i32 = arith.constant 16 : i32
    %25 = vector.broadcast %c16_i32 : i32 to vector<8x128xi32>
    %26 = arith.cmpi slt, %22, %25 : vector<8x128xi32>
    %27 = arith.andi %24, %26 : vector<8x128xi1>
    %cst_17 = arith.constant -2.000000e+01 : f32
    %cst_18 = arith.constant 2.000000e+00 : f32
    %28 = vector.broadcast %cst_17 : f32 to vector<8x128xf32>
    %29 = arith.maximumf %28, %21 : vector<8x128xf32>
    %30 = vector.broadcast %cst_18 : f32 to vector<8x128xf32>
    %31 = arith.minimumf %30, %29 : vector<8x128xf32>
    %32 = arith.select %27, %31, %21 : vector<8x128xi1>, vector<8x128xf32>
    %c0_19 = arith.constant 0 : index
    %c0_20 = arith.constant 0 : index
    %33 = vector.load %arg8[%c0_19, %c0_20] : memref<8x128xf32, #tpu.memory_space<vmem>>, vector<8x128xf32>
    tpu.vector_store %arg8[%c0_19, %c0_20], %32 {strides = array<i32>} : memref<8x128xf32, #tpu.memory_space<vmem>>, vector<8x128xf32>,
    return
  }
  func.func @transform_0(%arg0: i32) -> (i32, i32) {
    %c0_i32 = arith.constant 0 : i32
    %c0_i32_0 = arith.constant 0 : i32
    return %arg0, %c0_i32 : i32, i32
  }
  func.func @transform_1(%arg0: i32) -> (i32, i32) {
    %c0_i32 = arith.constant 0 : i32
    %c0_i32_0 = arith.constant 0 : i32
    %c0_i32_1 = arith.constant 0 : i32
    return %c0_i32, %c0_i32_0 : i32, i32
  }
  func.func @transform_2(%arg0: i32) -> (i32, i32) {
    %c0_i32 = arith.constant 0 : i32
    %c0_i32_0 = arith.constant 0 : i32
    %c0_i32_1 = arith.constant 0 : i32
    return %c0_i32, %c0_i32_0 : i32, i32
  }
  func.func @transform_3(%arg0: i32) -> (i32, i32) {
    %c0_i32 = arith.constant 0 : i32
    %c0_i32_0 = arith.constant 0 : i32
    %c0_i32_1 = arith.constant 0 : i32
    return %c0_i32, %c0_i32_0 : i32, i32
  }
  func.func @transform_4(%arg0: i32) -> (i32, i32) {
    %c0_i32 = arith.constant 0 : i32
    %c0_i32_0 = arith.constant 0 : i32
    %c0_i32_1 = arith.constant 0 : i32
    return %c0_i32, %c0_i32_0 : i32, i32
  }
  func.func @transform_5(%arg0: i32) -> (i32, i32) {
    %c0_i32 = arith.constant 0 : i32
    %c0_i32_0 = arith.constant 0 : i32
    %c0_i32_1 = arith.constant 0 : i32
    return %c0_i32, %c0_i32_0 : i32, i32
  }
  func.func @transform_6(%arg0: i32) -> (i32, i32) {
    %c0_i32 = arith.constant 0 : i32
    %c0_i32_0 = arith.constant 0 : i32
    %c0_i32_1 = arith.constant 0 : i32
    return %c0_i32, %c0_i32_0 : i32, i32
  }
  func.func @transform_7(%arg0: i32) -> (i32, i32) {
    %c0_i32 = arith.constant 0 : i32
    %c0_i32_0 = arith.constant 0 : i32
    return %arg0, %c0_i32 : i32, i32
  }
}

</mosaic_0001>

<bundles_post_ra>
// kernel: tpu_custom_call.1
= control target key start
LH: loop header
LB: loop body
LE: loop exit
PB: predicated region body
PF: predicated region fallthrough
CT: control target
= control target key end

     0   :  { %12 = vsyncpa [#allocation3], 0  ;;  %s608_s0 = inlined_call_operand.hbm [shape: bf16[8,16], index: 0, kind: input, shape index: {}]   ;;  %s609_s1 = inlined_call_operand.hbm [shape: bf16[16,128], index: 1, kind: input, shape index: {}]   ;;  %s610_s2 = inlined_call_operand.vmem [shape: f32[1,128], index: 2, kind: input, shape index: {}]   ;;  %s611_s3 = inlined_call_operand.hbm [shape: bf16[128,128], index: 3, kind: input, shape index: {}]   ;;  %s612_s4 = inlined_call_operand.vmem [shape: f32[1,128], index: 4, kind: input, shape index: {}]   ;;  %s613_s5 = inlined_call_operand.hbm [shape: bf16[128,128], index: 5, kind: input, shape index: {}]   ;;  %s614_s6 = inlined_call_operand.vmem [shape: f32[1,128], index: 6, kind: input, shape index: {}]   ;;  %s615_s7 = inlined_call_operand.hbm [shape: f32[8,128], index: 7, kind: output, shape index: {}]  }
   0x1   :  { %13 = vsyncpa [#allocation6], 0 }
   0x2   :  { %14 = vsyncpa [#allocation9], 0  ;;  %s31_s26 = sshll.u32 %s609_s1, 4  ;;  %s32_s26 = int_to_ptr.hbm [resolvable:$true] %s31_s26 }
   0x3   :  { %15 = vsyncpa [#allocation4], 0  ;;  %s537_s27 = smov [#allocation5]   ;;  %s21_s8 = sshll.u32 %s608_s0, 4  ;;  %s22_s8 = int_to_ptr.hbm [resolvable:$true] %s21_s8 }
   0x4   :  { %s33_s28 = sshll.u32 %s537_s27, 4  ;;  %s538_s9 = smov 64   ;;  %s34_s28 = int_to_ptr.vmem [resolvable:$true] %s33_s28 }
   0x5   :  { %s539_s10 = smov 4   ;;  %s540_s11 = smov [#allocation2]  }
   0x6   :  { %39 = dma.hbm_to_vmem [thread:$0]  %s32_s26, 128, %s34_s28, [#allocation6], %s538_s9, %s538_s9, %s539_s10  }
   0x7   :  { %s23_s12 = sshll.u32 %s540_s11, 4  ;;  %s46_s15 = sshll.u32 %s611_s3, 4  ;;  %s24_s12 = int_to_ptr.vmem [resolvable:$true] %s23_s12  ;;  %s47_s15 = int_to_ptr.hbm [resolvable:$true] %s46_s15 }
   0x8   :  { %26 = dma.hbm_to_vmem [thread:$0]  %s22_s8, 64, %s24_s12, [#allocation3]  }
   0x9   :  { %s61_s17 = sshll.u32 %s613_s5, 4  ;;  %s541_s18 = smov [#allocation7]   ;;  %s62_s17 = int_to_ptr.hbm [resolvable:$true] %s61_s17 }
   0xa   :  { %s48_s19 = sshll.u32 %s541_s18, 4  ;;  %s542_s0 = smov [#allocation8]   ;;  %s49_s19 = int_to_ptr.vmem [resolvable:$true] %s48_s19 }
   0xb   :  { %54 = dma.hbm_to_vmem [thread:$0]  %s47_s15, 1024, %s49_s19, [#allocation6], %s538_s9, %s538_s9, %s539_s10  }
   0xc   :  { %s63_s20 = sshll.u32 %s542_s0, 4  ;;  %s64_s20 = int_to_ptr.vmem [resolvable:$true] %s63_s20 }
   0xd   :  { %69 = dma.hbm_to_vmem [thread:$0]  %s62_s17, 1024, %s64_s20, [#allocation9], %s538_s9, %s538_s9, %s539_s10  }
   0xe   :  { %529 = dma.done.wait [#allocation3], 64  }
   0xf   :  { %530 = vsyncadd [#allocation3], 4294967232 }
  0x10   :  { %531 = dma.done.wait [#allocation6], 1152  }
  0x11   :  { %532 = vsyncadd [#allocation6], 4294966144 }
  0x12   :  { %533 = dma.done.wait [#allocation9], 1024  }
  0x13   :  { %534 = vsyncadd [#allocation9], 4294966272  ;;  %v382_v0 = vld [vmem:[#allocation5] sm:$0xff]  ;;  %v89_v2 = vld [vmem:[#allocation2] sm:$0xf]  ;;  %vm102_vm0 = vcmask 130048   ;;  %v285_v30 = vlaneseq }
  0x14   :  { %v390_v1 = vld [vmem:[#allocation7 + $0x38] sm:$0xff]  ;;  %113 = vmatpush.bf16.msra.mxu0 %v382_v0  ;;  %v389_v3 = vld [vmem:[#allocation7 + $0x30] sm:$0xff]  ;;  %v388_v4 = vld [vmem:[#allocation7 + $0x28] sm:$0xff]  ;;  %s543_s24 = smov [#allocation10]   ;;  %s301_s27 = sshll.u32 %s615_s7, 4  ;;  %s302_s27 = int_to_ptr.hbm [resolvable:$true] %s301_s27 }
  0x15   :  { %189 = vmatpush.bf16.msra.mxu1 %v390_v1  ;;  %v387_v5 = vld [vmem:[#allocation7 + $0x20] sm:$0xff]  ;;  %v386_v6 = vld [vmem:[#allocation7 + $0x18] sm:$0xff]  ;;  %v385_v7 = vld [vmem:[#allocation7 + $0x10] sm:$0xff]  ;;  %v286_v32 = vand.u32 127, %v285_v30  ;;  %s299_s25 = sshll.u32 %s543_s24, 4  ;;  %s300_s25 = int_to_ptr.vmem [resolvable:$true] %s299_s25 }
  0x16   :  { %v384_v8 = vld [vmem:[#allocation7 + $0x8] sm:$0xff]  ;;  %v383_v9 = vld [vmem:[#allocation7] sm:$0xff]  ;;  %v398_v10 = vld [vmem:[#allocation8 + $0x38] sm:$0xff] }
  0x17   :  { %317 = vmatmul.msk.bf16.vlgmr.msra.gmra.mxu0 %vm102_vm0, %v89_v2  ;;  %272 = vmatpush.bf16.msra.mxu2 %v398_v10  ;;  %v397_v11 = vld [vmem:[#allocation8 + $0x30] sm:$0xff]  ;;  %v396_v12 = vld [vmem:[#allocation8 + $0x28] sm:$0xff]  ;;  %v395_v13 = vld [vmem:[#allocation8 + $0x20] sm:$0xff]  ;;  %vm287_vm1 = vcmp.ge.s32.totalorder %v286_v32, 8  ;;  %vm288_vm2 = vcmp.lt.s32.totalorder %v286_v32, 16 }
  0x18   :  { %v394_v14 = vld [vmem:[#allocation8 + $0x18] sm:$0xff]  ;;  %v393_v15 = vld [vmem:[#allocation8 + $0x10] sm:$0xff]  ;;  %v392_v22 = vld [vmem:[#allocation8 + $0x8] sm:$0xff] }
  0x19   :  { %190 = vmatpush.bf16.msra.mxu1 %v389_v3  ;;  %v406_v16 = vld [vmem:[%s610_s2] ss:$0 sm:$0xff]  ;;  %v391_v23 = vld [vmem:[#allocation8] sm:$0xff]  ;;  %vm289_vm3 = vmand %vm287_vm1, %vm288_vm2 }
  0x1a   :  { %v407_v24 = vld [vmem:[%s612_s4] ss:$0 sm:$0xff] }
  0x1b   :  { %273 = vmatpush.bf16.msra.mxu2 %v397_v11  ;;  %v408_v31 = vld [vmem:[%s614_s6] ss:$0 sm:$0xff] }
  0x1d   :  { %191 = vmatpush.bf16.msra.mxu1 %v388_v4 }
  0x1f   :  { %274 = vmatpush.bf16.msra.mxu2 %v396_v12 }
  0x21   :  { %192 = vmatpush.bf16.msra.mxu1 %v387_v5 }
  0x23   :  { %275 = vmatpush.bf16.msra.mxu2 %v395_v13 }
  0x25   :  { %193 = vmatpush.bf16.msra.mxu1 %v386_v6 }
  0x27   :  { %276 = vmatpush.bf16.msra.mxu2 %v394_v14 }
  0x29   :  { %194 = vmatpush.bf16.msra.mxu1 %v385_v7 }
  0x2b   :  { %277 = vmatpush.bf16.msra.mxu2 %v393_v15 }
  0x2d   :  { %195 = vmatpush.bf16.msra.mxu1 %v384_v8 }
  0x2f   :  { %278 = vmatpush.bf16.msra.mxu2 %v392_v22 }
  0x31   :  { %196 = vmatpush.bf16.msra.mxu1 %v383_v9 }
  0x33   :  { %279 = vmatpush.bf16.msra.mxu2 %v391_v23 }
  0x94   :  { %v115_v17 = vpop.f32.mrf.mxu0 }
  0x95   :  { %v116_v18 = vadd.f32 %v406_v16, %v115_v17 }
  0x97   :  { %v119_v19 = vmax.f32 %v116_v18, 0.0 }
  0x99   :  { %v120_v20 = vpack.c.bf16 %v119_v19, %v119_v19 }
  0x9b   :  { %197 = vmatmul.bf16.vlgmr.msra.gmra.mxu1 %v120_v20 }
  0x9c   :  { %v117_v21 = vpop.f32.mrf.mxu0 }
 0x118   :  { %v198_v25 = vpop.f32.mrf.mxu1 }
 0x119   :  { %v199_v26 = vadd.f32 %v407_v24, %v198_v25 }
 0x11b   :  { %v202_v27 = vmax.f32 %v199_v26, 0.0 }
 0x11d   :  { %v203_v28 = vpack.c.bf16 %v202_v27, %v202_v27 }
 0x11f   :  { %280 = vmatmul.bf16.vlgmr.msra.gmra.mxu2 %v203_v28 }
 0x120   :  { %v200_v29 = vpop.f32.mrf.mxu1 }
 0x1a2   :  { %v281_v33 = vpop.f32.mrf.mxu2 }
 0x1a3   :  { %v282_v34 = vadd.f32 %v408_v31, %v281_v33 }
 0x1a5   :  { %v290_v35 = vmax.f32 %v282_v34, -20.0 }
 0x1a7   :  { %v291_v36 = vmin.f32 %v290_v35, 2.0 }
 0x1a9   :  { %v292_v37 = vsel %vm289_vm3, %v291_v36, %v282_v34 }
 0x1aa   :  { %v283_v38 = vpop.f32.mrf.mxu2  ;;  %293 = vst [vmem:[#allocation10] sm:$0xff] %v292_v37 }
 0x1ab   :  { %304 = dma.vmem_to_hbm [thread:$0]  %s300_s25, 128, %s302_s27, [#allocation4]  }
 0x1ac   :  { %535 = dma.done.wait [#allocation4], 128  }
 0x1ad   :  { %536 = vsyncadd [#allocation4], 4294967168 }
 0x1ae   :  { %309 = vsyncpa [#allocation3], 1 }
 0x1af   :  { %310 = vsyncpa [#allocation6], 1 }
 0x1b0   :  { %311 = vsyncpa [#allocation9], 1 }
 0x1b1   :  { %312 = vsyncpa [#allocation4], 1 }

</bundles_post_ra>
